<compile_context>
chip_gen: v6e
topology: v6e:2x2x1
jax: 0.10.0
libtpu: 0.0.40
codegen_flags: <defaults>
</compile_context>

<pallas_src>
import functools

import jax
import jax.numpy as jnp
from jax.experimental import pallas as pl
from jax.experimental.pallas import tpu as pltpu


def _round_up(x, m):
    return (x + m - 1) // m * m


# ----------------------------------------------------------------------------------
# Kernel 1: fused linear  (TM, K) @ (K, TN) + bias(1, TN)  -> (TM, TN)
#   bf16 MXU operands, f32 accumulate, configurable output dtype.
# ----------------------------------------------------------------------------------
def _linear_kernel(x_ref, w_ref, b_ref, o_ref):
    acc = jnp.dot(x_ref[...], w_ref[...], preferred_element_type=jnp.float32)
    o_ref[...] = (acc + b_ref[...]).astype(o_ref.dtype)


def fused_linear(x_bf16, w_bf16, bias_f32, *, out_dtype=jnp.float32, tm=256, tn=256):
    """(M, K) @ (K, N) + bias[N].  bf16 operands, f32 accumulation."""
    M, K = x_bf16.shape
    K2, N = w_bf16.shape
    assert K == K2

    sub = 16 if jnp.dtype(out_dtype).itemsize == 2 else 8   # bf16 sublane packing
    TM = min(tm, _round_up(M, sub))
    if TM >= M and M >= 2 * sub:
        # give the megacore / v7x second core at least 2 parallel M tiles
        TM = _round_up((M + 1) // 2, sub)
    Mp = _round_up(M, TM)

    if N <= 512:                     # keep the whole N resident (full-dim block)
        TN, Np = N, N
    else:                            # lane-dense 256-wide tiles for the 256-wide MXU
        TN = tn
        Np = _round_up(N, TN)

    xp = x_bf16 if Mp == M else jnp.pad(x_bf16, ((0, Mp - M), (0, 0)))
    wp = w_bf16 if Np == N else jnp.pad(w_bf16, ((0, 0), (0, Np - N)))
    bp = bias_f32.reshape(1, N).astype(jnp.float32)
    if Np != N:
        bp = jnp.pad(bp, ((0, 0), (0, Np - N)))

    grid = (Mp // TM, Np // TN)
    osize = jnp.dtype(out_dtype).itemsize
    flops = 2 * Mp * K * Np
    # LHS block is resident across the (fast) N sweep -> read once per M row band.
    bytes_accessed = (Mp * K * 2
                      + K * Np * 2 * grid[0]
                      + Np * 4 * grid[0]
                      + Mp * Np * osize)
    footprint = 2 * (TM * K * 2 + K * TN * 2 + TN * 4) + 2 * TM * TN * osize
    vmem_limit = int(min(48 << 20, max(32 << 20, 4 * footprint)))

    out = pl.pallas_call(
        _linear_kernel,
        out_shape=jax.ShapeDtypeStruct((Mp, Np), out_dtype),
        grid=grid,
        in_specs=[
            pl.BlockSpec((TM, K), lambda i, j: (i, 0)),
            pl.BlockSpec((K, TN), lambda i, j: (0, j)),
            pl.BlockSpec((1, TN), lambda i, j: (0, j)),
        ],
        out_specs=pl.BlockSpec((TM, TN), lambda i, j: (i, j)),
        compiler_params=pltpu.CompilerParams(
            dimension_semantics=("parallel", "parallel"),
            vmem_limit_bytes=vmem_limit),
        cost_estimate=pl.CostEstimate(flops=flops, transcendentals=0,
                                      bytes_accessed=bytes_accessed),
    )(xp, wp, bp)

    if Mp != M or Np != N:
        out = out[:M, :N]
    return out


# ----------------------------------------------------------------------------------
# Kernel 2: fused attention core + output projection, per (batch, head) grid step.
#   s  = q @ k^T * scale            (written out as `attn`, f32, NO softmax per spec)
#   o  = s @ v                      (per-head, stays in registers/VMEM)
#   acc += o @ Wproj_h              (per-head slice of proj weight, f32 VMEM scratch)
#   on last head: y = acc + b_proj
# ----------------------------------------------------------------------------------
def _attn_proj_kernel(q_ref, k_ref, v_ref, wp_ref, bp_ref, attn_ref, y_ref, acc_ref,
                      *, scale):
    h = pl.program_id(1)

    @pl.when(h == 0)
    def _():
        acc_ref[...] = jnp.zeros_like(acc_ref)

    q = q_ref[0, 0]                       # (N, d)  bf16
    k = k_ref[0, 0]                       # (N, d)  bf16
    v = v_ref[0, 0]                       # (N, d)  bf16

    # TODO(synk): replace with the KAN score function when it is specified.
    s = jax.lax.dot_general(q, k, (((1,), (1,)), ((), ())),
                            preferred_element_type=jnp.float32) * scale   # (N, N) f32
    attn_ref[0, 0] = s.astype(attn_ref.dtype)

    o = jnp.dot(s.astype(v.dtype), v, preferred_element_type=jnp.float32)       # (N, d)
    acc_ref[...] += jnp.dot(o.astype(wp_ref.dtype), wp_ref[0],
                            preferred_element_type=jnp.float32)                  # (N, C)

    @pl.when(h == pl.num_programs(1) - 1)
    def _():
        y_ref[0] = (acc_ref[...] + bp_ref[...]).astype(y_ref.dtype)


def attn_and_proj(q, k, v, wp, bp, *, scale):
    """q,k,v: (B,H,N,d) bf16; wp: (H,d,C) bf16; bp: (1,C) f32 -> (attn f32, y f32)."""
    B, H, N, d = q.shape
    C = wp.shape[2]

    flops = B * H * (4 * N * N * d + 2 * N * d * C)
    bytes_accessed = (3 * B * H * N * d * 2 + B * H * d * C * 2 + B * C * 4
                      + B * H * N * N * 4 + B * N * C * 4)
    footprint = (2 * (3 * N * d * 2 + d * C * 2 + C * 4)
                 + 2 * (N * N * 4 + N * C * 4) + N * C * 4)
    vmem_limit = int(min(48 << 20, max(32 << 20, 4 * footprint)))

    attn, y = pl.pallas_call(
        functools.partial(_attn_proj_kernel, scale=float(scale)),
        out_shape=(jax.ShapeDtypeStruct((B, H, N, N), jnp.float32),
                   jax.ShapeDtypeStruct((B, N, C), jnp.float32)),
        grid=(B, H),                                   # head (reduction) axis last
        in_specs=[
            pl.BlockSpec((1, 1, N, d), lambda b, h: (b, h, 0, 0)),   # q
            pl.BlockSpec((1, 1, N, d), lambda b, h: (b, h, 0, 0)),   # k
            pl.BlockSpec((1, 1, N, d), lambda b, h: (b, h, 0, 0)),   # v
            pl.BlockSpec((1, d, C), lambda b, h: (h, 0, 0)),         # proj weight slice
            pl.BlockSpec((1, C), lambda b, h: (0, 0)),               # proj bias
        ],
        out_specs=(
            pl.BlockSpec((1, 1, N, N), lambda b, h: (b, h, 0, 0)),   # attn
            pl.BlockSpec((1, N, C), lambda b, h: (b, 0, 0)),         # y (resident over h)
        ),
        scratch_shapes=[pltpu.VMEM((N, C), jnp.float32)],
        compiler_params=pltpu.CompilerParams(
            dimension_semantics=("parallel", "arbitrary"),
            vmem_limit_bytes=vmem_limit),
        cost_estimate=pl.CostEstimate(flops=flops, transcendentals=0,
                                      bytes_accessed=bytes_accessed),
    )(q, k, v, wp, bp)
    return attn, y


# ----------------------------------------------------------------------------------
# Attention.forward
# ----------------------------------------------------------------------------------
def attention_forward(x, params, *, num_heads, qk_scale=None):
    B, N, C = x.shape
    d = C // num_heads
    scale = qk_scale if qk_scale is not None else d ** (-0.5)

    # qkv = self.qkv(x): (B*N, C) @ (C, 3C) (+bias) -> emitted bf16 (next stage is bf16).
    xb = x.reshape(B * N, C).astype(jnp.bfloat16)
    wqkv_t = params["w_qkv"].T.astype(jnp.bfloat16)              # (C, 3C)
    bqkv = params.get("b_qkv")
    bqkv = (jnp.zeros((3 * C,), jnp.float32) if bqkv is None
            else bqkv.astype(jnp.float32))
    y = fused_linear(xb, wqkv_t, bqkv, out_dtype=jnp.bfloat16)   # (B*N, 3C) bf16

    # reshape(B, N, 3, H, d).permute(2, 0, 3, 1, 4) -> q, k, v of shape (B, H, N, d)
    y = y.reshape(B, N, 3, num_heads, d)
    qkv = jnp.transpose(y, (2, 0, 3, 1, 4))
    q, k, v = qkv[0], qkv[1], qkv[2]

    # proj weight rearranged so the kernel can accumulate per-head partial projections:
    # x_concat @ W_proj^T == sum_h  o_h @ W_proj^T[h*d:(h+1)*d, :]
    wp = params["w_proj"].T.reshape(num_heads, d, C).astype(jnp.bfloat16)
    bp = params["b_proj"].reshape(1, C).astype(jnp.float32)

    attn, out = attn_and_proj(q, k, v, wp, bp, scale=scale)
    # proj_drop: identity in eval mode.  TODO(synk): training-mode dropout not implemented.
    return out, attn


# ----------------------------------------------------------------------------------
# Pure-JAX reference (same bf16 operand quantization) for the correctness check
# ----------------------------------------------------------------------------------
def _ref_forward(x, p, num_heads, scale):
    B, N, C = x.shape
    d = C // num_heads
    xb = x.astype(jnp.bfloat16)
    y = jnp.dot(xb, p["w_qkv"].T.astype(jnp.bfloat16),
                preferred_element_type=jnp.float32).astype(jnp.bfloat16)
    y = y.reshape(B, N, 3, num_heads, d)
    qkv = jnp.transpose(y, (2, 0, 3, 1, 4))
    q, k, v = qkv[0], qkv[1], qkv[2]
    attn = jnp.einsum("bhqd,bhkd->bhqk", q, k,
                      preferred_element_type=jnp.float32) * scale
    o = jnp.einsum("bhqk,bhkd->bhqd", attn.astype(jnp.bfloat16), v,
                   preferred_element_type=jnp.float32)
    o = jnp.transpose(o, (0, 2, 1, 3)).reshape(B, N, C)
    out = jnp.dot(o.astype(jnp.bfloat16), p["w_proj"].T.astype(jnp.bfloat16),
                  preferred_element_type=jnp.float32) + p["b_proj"][None, None, :]
    return out, attn


if __name__ == "__main__":
    # Small shapes consistent with the module: dim=32, num_patches (seq) = 8,
    # num_heads=4 (head_dim=8), batch=2, qkv_bias=False, eval-mode dropout.
    B, N, C, H = 2, 8, 32, 4
    d = C // H

    key = jax.random.PRNGKey(0)
    ks = jax.random.split(key, 4)
    params = {
        "w_qkv": jax.random.normal(ks[0], (3 * C, C), jnp.float32) * 0.05,
        "w_proj": jax.random.normal(ks[1], (C, C), jnp.float32) * 0.05,
        "b_proj": jax.random.normal(ks[2], (C,), jnp.float32) * 0.1,
    }
    x = jax.random.normal(ks[3], (B, N, C), jnp.float32)

    fwd = jax.jit(functools.partial(attention_forward, num_heads=H))
    out, attn = jax.block_until_ready(fwd(x, params))

    assert out.shape == (B, N, C), out.shape
    assert attn.shape == (B, H, N, N), attn.shape

    ref_out, ref_attn = _ref_forward(x, params, H, d ** (-0.5))
    attn_err = float(jnp.max(jnp.abs(attn - ref_attn)))
    out_err = float(jnp.max(jnp.abs(out - ref_out)))
    assert jnp.allclose(attn, ref_attn, rtol=2e-2, atol=2e-2), attn_err
    assert jnp.allclose(out, ref_out, rtol=2e-2, atol=2e-2), out_err

    print("KERNEL_OK")
</pallas_src>

<mosaic_0001>
module attributes {stable_mosaic.version = 11 : i64} {
  func.func @_linear_kernel(%arg0: i32, %arg1: i32, %arg2: memref<16x32xbf16, #tpu.memory_space<vmem>>, %arg3: memref<32x96xbf16, #tpu.memory_space<vmem>>, %arg4: memref<1x96xf32, #tpu.memory_space<vmem>>, %arg5: memref<16x96xbf16, #tpu.memory_space<vmem>>) attributes {dimension_semantics = [#tpu.dimension_semantics<parallel>, #tpu.dimension_semantics<parallel>], iteration_bounds = array<i64: 1, 1>, scalar_prefetch = 0 : i64, scratch_operands = 0 : i64, tpu.core_type = #tpu.core_type<tc>, window_params = [{transform_indices = @transform_0, window_bounds = array<i64: 16, 32>}, {transform_indices = @transform_1, window_bounds = array<i64: 32, 96>}, {transform_indices = @transform_2, window_bounds = array<i64: 1, 96>}, {transform_indices = @transform_3, window_bounds = array<i64: 16, 96>}]} {
    %c0 = arith.constant 0 : index
    %c0_0 = arith.constant 0 : index
    %0 = vector.load %arg2[%c0, %c0_0] : memref<16x32xbf16, #tpu.memory_space<vmem>>, vector<16x32xbf16>
    %c0_1 = arith.constant 0 : index
    %c0_2 = arith.constant 0 : index
    %1 = vector.load %arg3[%c0_1, %c0_2] : memref<32x96xbf16, #tpu.memory_space<vmem>>, vector<32x96xbf16>
    %cst = arith.constant dense<0.000000e+00> : vector<16x96xf32>
    %2 = tpu.matmul %0, %1, %cst {dimension_numbers = #tpu.dot_dimension_numbers<[1], [0], [0], [1], [0, 0, 1, 1], [], []>} : vector<16x32xbf16>, vector<32x96xbf16>, vector<16x96xf32> -> vector<16x96xf32>
    %c0_3 = arith.constant 0 : index
    %c0_4 = arith.constant 0 : index
    %3 = vector.load %arg4[%c0_3, %c0_4] : memref<1x96xf32, #tpu.memory_space<vmem>>, vector<1x96xf32>
    %4 = vector.broadcast %3 : vector<1x96xf32> to vector<16x96xf32>
    %5 = arith.addf %2, %4 : vector<16x96xf32>
    %6 = arith.truncf %5 : vector<16x96xf32> to vector<16x96xbf16>
    %c0_5 = arith.constant 0 : index
    %c0_6 = arith.constant 0 : index
    %7 = vector.load %arg5[%c0_5, %c0_6] : memref<16x96xbf16, #tpu.memory_space<vmem>>, vector<16x96xbf16>
    tpu.vector_store %arg5[%c0_5, %c0_6], %6 {strides = array<i32>} : memref<16x96xbf16, #tpu.memory_space<vmem>>, vector<16x96xbf16>,
    return
  }
  func.func @transform_0(%arg0: i32, %arg1: i32) -> (i32, i32) {
    %c0_i32 = arith.constant 0 : i32
    %c0_i32_0 = arith.constant 0 : i32
    return %arg0, %c0_i32 : i32, i32
  }
  func.func @transform_1(%arg0: i32, %arg1: i32) -> (i32, i32) {
    %c0_i32 = arith.constant 0 : i32
    %c0_i32_0 = arith.constant 0 : i32
    return %c0_i32, %arg1 : i32, i32
  }
  func.func @transform_2(%arg0: i32, %arg1: i32) -> (i32, i32) {
    %c0_i32 = arith.constant 0 : i32
    %c0_i32_0 = arith.constant 0 : i32
    return %c0_i32, %arg1 : i32, i32
  }
  func.func @transform_3(%arg0: i32, %arg1: i32) -> (i32, i32) {
    %c0_i32 = arith.constant 0 : i32
    return %arg0, %arg1 : i32, i32
  }
}

module attributes {stable_mosaic.version = 11 : i64} {
  func.func @_attn_proj_kernel(%arg0: i32, %arg1: i32, %arg2: memref<1x1x8x8xbf16, #tpu.memory_space<vmem>>, %arg3: memref<1x1x8x8xbf16, #tpu.memory_space<vmem>>, %arg4: memref<1x1x8x8xbf16, #tpu.memory_space<vmem>>, %arg5: memref<1x8x32xbf16, #tpu.memory_space<vmem>>, %arg6: memref<1x32xf32, #tpu.memory_space<vmem>>, %arg7: memref<1x1x8x8xf32, #tpu.memory_space<vmem>>, %arg8: memref<1x8x32xf32, #tpu.memory_space<vmem>>, %arg9: memref<8x32xf32, #tpu.memory_space<vmem>>) attributes {dimension_semantics = [#tpu.dimension_semantics<parallel>, #tpu.dimension_semantics<arbitrary>], iteration_bounds = array<i64: 2, 4>, scalar_prefetch = 0 : i64, scratch_operands = 1 : i64, tpu.core_type = #tpu.core_type<tc>, window_params = [{transform_indices = @transform_0, window_bounds = array<i64: 1, 1, 8, 8>}, {transform_indices = @transform_1, window_bounds = array<i64: 1, 1, 8, 8>}, {transform_indices = @transform_2, window_bounds = array<i64: 1, 1, 8, 8>}, {transform_indices = @transform_3, window_bounds = array<i64: 1, 8, 32>}, {pipeline_mode = #tpu.pipeline_mode<synchronous>, transform_indices = @transform_4, window_bounds = array<i64: 1, 32>}, {transform_indices = @transform_5, window_bounds = array<i64: 1, 1, 8, 8>}, {transform_indices = @transform_6, window_bounds = array<i64: 1, 8, 32>}]} {
    %c0_i32 = arith.constant 0 : i32
    %0 = arith.cmpi eq, %arg1, %c0_i32 : i32
    %1 = arith.extui %0 : i1 to i32
    %c0_i32_0 = arith.constant 0 : i32
    %2 = arith.cmpi ne, %1, %c0_i32_0 : i32
    scf.if %2 {
      %cst_27 = arith.constant 0.000000e+00 : f32
      %27 = vector.broadcast %cst_27 : f32 to vector<8x32xf32>
      %c0_28 = arith.constant 0 : index
      %c0_29 = arith.constant 0 : index
      %28 = vector.load %arg9[%c0_28, %c0_29] : memref<8x32xf32, #tpu.memory_space<vmem>>, vector<8x32xf32>
      tpu.vector_store %arg9[%c0_28, %c0_29], %27 {strides = array<i32>} : memref<8x32xf32, #tpu.memory_space<vmem>>, vector<8x32xf32>,
    } else {
    }
    %c0 = arith.constant 0 : index
    %c0_1 = arith.constant 0 : index
    %c0_2 = arith.constant 0 : index
    %c0_3 = arith.constant 0 : index
    %3 = vector.load %arg2[%c0, %c0_1, %c0_2, %c0_3] : memref<1x1x8x8xbf16, #tpu.memory_space<vmem>>, vector<1x1x8x8xbf16>
    %4 = vector.shape_cast %3 : vector<1x1x8x8xbf16> to vector<8x8xbf16>
    %c0_4 = arith.constant 0 : index
    %c0_5 = arith.constant 0 : index
    %c0_6 = arith.constant 0 : index
    %c0_7 = arith.constant 0 : index
    %5 = vector.load %arg3[%c0_4, %c0_5, %c0_6, %c0_7] : memref<1x1x8x8xbf16, #tpu.memory_space<vmem>>, vector<1x1x8x8xbf16>
    %6 = vector.shape_cast %5 : vector<1x1x8x8xbf16> to vector<8x8xbf16>
    %c0_8 = arith.constant 0 : index
    %c0_9 = arith.constant 0 : index
    %c0_10 = arith.constant 0 : index
    %c0_11 = arith.constant 0 : index
    %7 = vector.load %arg4[%c0_8, %c0_9, %c0_10, %c0_11] : memref<1x1x8x8xbf16, #tpu.memory_space<vmem>>, vector<1x1x8x8xbf16>
    %8 = vector.shape_cast %7 : vector<1x1x8x8xbf16> to vector<8x8xbf16>
    %cst = arith.constant dense<0.000000e+00> : vector<8x8xf32>
    %9 = tpu.matmul %4, %6, %cst {dimension_numbers = #tpu.dot_dimension_numbers<[1], [1], [0], [0], [0, 0, 1, 0], [], []>} : vector<8x8xbf16>, vector<8x8xbf16>, vector<8x8xf32> -> vector<8x8xf32>
    %cst_12 = arith.constant 0.353553385 : f32
    %10 = vector.broadcast %cst_12 : f32 to vector<8x8xf32>
    %11 = arith.mulf %9, %10 : vector<8x8xf32>
    %c0_13 = arith.constant 0 : index
    %c0_14 = arith.constant 0 : index
    %c0_15 = arith.constant 0 : index
    %c0_16 = arith.constant 0 : index
    %12 = vector.load %arg7[%c0_13, %c0_14, %c0_15, %c0_16] : memref<1x1x8x8xf32, #tpu.memory_space<vmem>>, vector<1x1x8x8xf32>
    %13 = vector.shape_cast %12 : vector<1x1x8x8xf32> to vector<8x8xf32>
    %14 = vector.shape_cast %11 : vector<8x8xf32> to vector<1x1x8x8xf32>
    tpu.vector_store %arg7[%c0_13, %c0_14, %c0_15, %c0_16], %14 {strides = array<i32>} : memref<1x1x8x8xf32, #tpu.memory_space<vmem>>, vector<1x1x8x8xf32>,
    %15 = arith.truncf %11 : vector<8x8xf32> to vector<8x8xbf16>
    %cst_17 = arith.constant dense<0.000000e+00> : vector<8x8xf32>
    %16 = tpu.matmul %15, %8, %cst_17 {dimension_numbers = #tpu.dot_dimension_numbers<[1], [0], [0], [1], [0, 0, 1, 1], [], []>} : vector<8x8xbf16>, vector<8x8xbf16>, vector<8x8xf32> -> vector<8x8xf32>
    %c0_18 = arith.constant 0 : index
    %c0_19 = arith.constant 0 : index
    %17 = vector.load %arg9[%c0_18, %c0_19] : memref<8x32xf32, #tpu.memory_space<vmem>>, vector<8x32xf32>
    %18 = arith.truncf %16 : vector<8x8xf32> to vector<8x8xbf16>
    %c0_20 = arith.constant 0 : index
    %c0_21 = arith.constant 0 : index
    %c0_22 = arith.constant 0 : index
    %19 = vector.load %arg5[%c0_20, %c0_21, %c0_22] : memref<1x8x32xbf16, #tpu.memory_space<vmem>>, vector<1x8x32xbf16>
    %20 = vector.shape_cast %19 : vector<1x8x32xbf16> to vector<8x32xbf16>
    %cst_23 = arith.constant dense<0.000000e+00> : vector<8x32xf32>
    %21 = tpu.matmul %18, %20, %cst_23 {dimension_numbers = #tpu.dot_dimension_numbers<[1], [0], [0], [1], [0, 0, 1, 1], [], []>} : vector<8x8xbf16>, vector<8x32xbf16>, vector<8x32xf32> -> vector<8x32xf32>
    %22 = arith.addf %17, %21 : vector<8x32xf32>
    %c0_24 = arith.constant 0 : index
    %c0_25 = arith.constant 0 : index
    %23 = vector.load %arg9[%c0_24, %c0_25] : memref<8x32xf32, #tpu.memory_space<vmem>>, vector<8x32xf32>
    tpu.vector_store %arg9[%c0_24, %c0_25], %22 {strides = array<i32>} : memref<8x32xf32, #tpu.memory_space<vmem>>, vector<8x32xf32>,
    %c3_i32 = arith.constant 3 : i32
    %24 = arith.cmpi eq, %arg1, %c3_i32 : i32
    %25 = arith.extui %24 : i1 to i32
    %c0_i32_26 = arith.constant 0 : i32
    %26 = arith.cmpi ne, %25, %c0_i32_26 : i32
    scf.if %26 {
      %c0_27 = arith.constant 0 : index
      %c0_28 = arith.constant 0 : index
      %27 = vector.load %arg9[%c0_27, %c0_28] : memref<8x32xf32, #tpu.memory_space<vmem>>, vector<8x32xf32>
      %c0_29 = arith.constant 0 : index
      %c0_30 = arith.constant 0 : index
      %28 = vector.load %arg6[%c0_29, %c0_30] : memref<1x32xf32, #tpu.memory_space<vmem>>, vector<1x32xf32>
      %29 = vector.broadcast %28 : vector<1x32xf32> to vector<8x32xf32>
      %30 = arith.addf %27, %29 : vector<8x32xf32>
      %c0_31 = arith.constant 0 : index
      %c0_32 = arith.constant 0 : index
      %c0_33 = arith.constant 0 : index
      %31 = vector.load %arg8[%c0_31, %c0_32, %c0_33] : memref<1x8x32xf32, #tpu.memory_space<vmem>>, vector<1x8x32xf32>
      %32 = vector.shape_cast %31 : vector<1x8x32xf32> to vector<8x32xf32>
      %33 = vector.shape_cast %30 : vector<8x32xf32> to vector<1x8x32xf32>
      tpu.vector_store %arg8[%c0_31, %c0_32, %c0_33], %33 {strides = array<i32>} : memref<1x8x32xf32, #tpu.memory_space<vmem>>, vector<1x8x32xf32>,
    } else {
    }
    return
  }
  func.func @transform_0(%arg0: i32, %arg1: i32) -> (i32, i32, i32, i32) {
    %c0_i32 = arith.constant 0 : i32
    %c0_i32_0 = arith.constant 0 : i32
    %c0_i32_1 = arith.constant 0 : i32
    return %arg0, %arg1, %c0_i32, %c0_i32_0 : i32, i32, i32, i32
  }
  func.func @transform_1(%arg0: i32, %arg1: i32) -> (i32, i32, i32, i32) {
    %c0_i32 = arith.constant 0 : i32
    %c0_i32_0 = arith.constant 0 : i32
    %c0_i32_1 = arith.constant 0 : i32
    return %arg0, %arg1, %c0_i32, %c0_i32_0 : i32, i32, i32, i32
  }
  func.func @transform_2(%arg0: i32, %arg1: i32) -> (i32, i32, i32, i32) {
    %c0_i32 = arith.constant 0 : i32
    %c0_i32_0 = arith.constant 0 : i32
    %c0_i32_1 = arith.constant 0 : i32
    return %arg0, %arg1, %c0_i32, %c0_i32_0 : i32, i32, i32, i32
  }
  func.func @transform_3(%arg0: i32, %arg1: i32) -> (i32, i32, i32) {
    %c0_i32 = arith.constant 0 : i32
    %c0_i32_0 = arith.constant 0 : i32
    %c0_i32_1 = arith.constant 0 : i32
    return %arg1, %c0_i32, %c0_i32_0 : i32, i32, i32
  }
  func.func @transform_4(%arg0: i32, %arg1: i32) -> (i32, i32) {
    %c0_i32 = arith.constant 0 : i32
    %c0_i32_0 = arith.constant 0 : i32
    %c0_i32_1 = arith.constant 0 : i32
    return %c0_i32, %c0_i32_0 : i32, i32
  }
  func.func @transform_5(%arg0: i32, %arg1: i32) -> (i32, i32, i32, i32) {
    %c0_i32 = arith.constant 0 : i32
    %c0_i32_0 = arith.constant 0 : i32
    %c0_i32_1 = arith.constant 0 : i32
    return %arg0, %arg1, %c0_i32, %c0_i32_0 : i32, i32, i32, i32
  }
  func.func @transform_6(%arg0: i32, %arg1: i32) -> (i32, i32, i32) {
    %c0_i32 = arith.constant 0 : i32
    %c0_i32_0 = arith.constant 0 : i32
    %c0_i32_1 = arith.constant 0 : i32
    return %arg0, %c0_i32, %c0_i32_0 : i32, i32, i32
  }
}

</mosaic_0001>

<bundles_post_ra>
// kernel: attention_forward.2
= control target key start
LH: loop header
LB: loop body
LE: loop exit
PB: predicated region body
PF: predicated region fallthrough
CT: control target
= control target key end

     0   :  { %v130_v0 = vmov 0.0   ;;  %vm131_vm0 = vmmov 0   ;;  %vm45_vm1 = vcmask 261120   ;;  %vm98_vm2 = vcmask 781312   ;;  %s170_s1 = inlined_call_operand.vmem [shape: bf16[32,96], index: 1, kind: input, shape index: {}]   ;;  %s171_s0 = inlined_call_operand.vmem [shape: bf16[16,32], index: 0, kind: input, shape index: {}]   ;;  %s172_s2 = inlined_call_operand.vmem [shape: f32[1,96], index: 2, kind: input, shape index: {}]   ;;  %s173_s3 = inlined_call_operand.vmem [shape: bf16[16,96], index: 3, kind: output, shape index: {}]  }
   0x1   :  { %117 = vmatprep.subr.bf16.mxu0 %v130_v0  ;;  %v127_v1 = vld [vmem:[%s170_s1 + $0x8] sm:$0xff]   ;;  %121 = vmatprep.mubr.msk.bf16.mxu0 %vm131_vm0, %v130_v0  ;;  %v128_v2 = vld [vmem:[%s170_s1] sm:$0xff]  }
   0x2   :  { %118 = vmatpush3.bf16.msra.mxu0 %v127_v1  ;;  %v129_v3 = vld [vmem:[%s171_s0] sm:$0xff]  }
   0x3   :  { %119 = vmatprep.subr.bf16.mxu0 %v130_v0  ;;  %v105_v4 = vld [vmem:[%s172_s2] ss:$0 sm:$0xff] }
   0x6   :  { %120 = vmatpush3.bf16.msra.mxu0 %v128_v2 }
   0x9   :  { %122 = vmatmul.mubr.msk.bf16.vlgmr.msra.gmra.mxu0 %vm45_vm1, %v129_v3 }
  0xc9   :  { %v83_v5 = vpop.f32.mrf.mxu0 }
  0xca   :  { %v84_v6 = vadd.f32 %v105_v4, %v83_v5 }
  0xcb   :  { %v123_v7 = vpop.f32.mrf.mxu0 }
  0xcc   :  { %v112_v8 = vpack.c.bf16 %v84_v6, %v84_v6 }
  0xcd   :  { %v86_v9 = vpop.f32.mrf.mxu0 }
  0xce   :  { %99 = vst.msk [vmem:[%s173_s3] sm:$0xf] %vm98_vm2, %v112_v8  ;;  %v87_v10 = vadd.f32 %v105_v4, %v86_v9 }
  0xcf   :  { %v124_v11 = vpop.f32.mrf.mxu0 }
  0xd0   :  { %v113_v12 = vpack.c.bf16 %v87_v10, %v87_v10 }
  0xd2   :  { %100 = vst.msk [vmem:[%s173_s3 + $0x4] sm:$0xf] %vm98_vm2, %v113_v12 }

// kernel: attention_forward.3
= control target key start
LH: loop header
LB: loop body
LE: loop exit
PB: predicated region body
PF: predicated region fallthrough
CT: control target
= control target key end

     0   :  { %s1316_s0 = inlined_call_operand.vmem [shape: bf16[2,4,8,8], index: 0, kind: input, shape index: {}]   ;;  %s1317_s1 = inlined_call_operand.vmem [shape: bf16[2,4,8,8], index: 1, kind: input, shape index: {}]   ;;  %s1318_s2 = inlined_call_operand.vmem [shape: bf16[2,4,8,8], index: 2, kind: input, shape index: {}]   ;;  %s1319_s3 = inlined_call_operand.vmem [shape: bf16[4,8,32], index: 3, kind: input, shape index: {}]   ;;  %s1320_s4 = inlined_call_operand.vmem [shape: f32[1,32], index: 4, kind: input, shape index: {}]   ;;  %s1321_s5 = inlined_call_operand.hbm [shape: f32[2,4,8,8], index: 5, kind: output, shape index: {0}]   ;;  %s1322_s6 = inlined_call_operand.hbm [shape: f32[2,8,32], index: 6, kind: output, shape index: {1}]  }
   0x1   :  { %1340 = sst [smem:[#allocation23_spill]] %s1322_s6 }
   0x2   :  { %12 = vsyncpa [#allocation4], 0 }
   0x3   :  { %14 = vsyncpa [#allocation4 + $0x1], 0 }
   0x4   :  { %15 = vsyncpa [#allocation6], 0 }
   0x5   :  { %17 = vsyncpa [#allocation6 + $0x1], 0  ;;  %s1072_s21 = smov 0   ;;  %s1074_s22 = smov 0  }
   0x6   :  { %s1076_s23 = smov 0   ;;  %s1078_s24 = smov 0  }
   0x7   :  { %s1080_s25 = smov 0   ;;  %s1082_s26 = smov 0  }
   0x8   :  { %s1084_s27 = smov 0   ;;  %s1086_s28 = smov 0  }
   0x9   :  { %s1088_s29 = smov 0   ;;  %s1090_s30 = smov 0  }
   0xa   :  { %s1092_s7 = smov 0  }
   0xb LB: > { %1341 = sst [smem:[#allocation9_spill]] %s990_s21  ;;  %s730_s8 = sadd.s32 4294967295, %s1030_s7   ;;  %s1030_s7 = sphi %s1092_s7, %s23_s7   ;;  %s1026_s30 = sphi %s1090_s30, %s1379_s30   ;;  %s1022_s29 = sphi %s1088_s29, %s1384_s29   ;;  %s1018_s28 = sphi %s1086_s28, %s1377_s28   ;;  %s1014_s27 = sphi %s1084_s27, %s1376_s27   ;;  %s1010_s26 = sphi %s1082_s26, %s1375_s26   ;;  %s1006_s25 = sphi %s1080_s25, %s1383_s25   ;;  %s1002_s24 = sphi %s1078_s24, %s1382_s24   ;;  %s998_s23 = sphi %s1076_s23, %s1373_s23   ;;  %s994_s22 = sphi %s1074_s22, %s1381_s22   ;;  %s990_s21 = sphi %s1072_s21, %s1380_s21  }
   0xc   : > { %1342 = sst [smem:[#allocation10_spill]] %s998_s23  ;;  %s731_s9 = sadd.s32 4294967294, %s1030_s7  }
   0xd   : > { %1343 = sst [smem:[#allocation11_spill]] %s1002_s24  ;;  %s32_s10 = sadd.s32 1, %s1022_s29 }
   0xe   : > { %1344 = sst [smem:[#allocation12_spill]] %s1010_s26  ;;  %s35_s11 = sadd.s32 1, %s1026_s30 }
   0xf   : > { %1345 = sst [smem:[#allocation13_spill]] %s1022_s29  ;;  %p33_p0 = scmp.ge.s32.totalorder %s32_s10, 4 }
  0x10   : > { %1346 = sst [smem:[#allocation14_spill]] %s1026_s30  ;;  %s175_s12 = sadd.s32 1, %s1010_s26 }
  0x11   : > { %1347 = sst [smem:[#allocation15_spill]] %s1030_s7  ;;  %p185_p1 = scmp.ne.s32.totalorder %s1010_s26, %s1006_s25 }
  0x12   : > { %p1134_p2 = scmp.eq.s32.totalorder %s730_s8, 7  ;;  %s1386_s10 = smov (%p33_p0, %s32_s10), 0 }
  0x13   : > { %1349 = sst [smem:[#allocation16_spill]] %s1386_s10  ;;  %s1388_s11 = smov (!%p33_p0, %s35_s11), %s1026_s30 }
  0x14   : > { %s171_s14 = ssub.s32 %s1022_s29, %s1386_s10  ;;  %p1145_p3 = por %p1134_p2, %p185_p1 }
  0x15   : > { %p37_p4 = scmp.ge.s32.totalorder %s1388_s11, 2  ;;  %p191_p5 = scmp.ne.s32.totalorder %s1006_s25, %s1002_s24 }
  0x16   : > { %p1151_p6 = scmp.eq.s32.totalorder %s731_s9, 7  ;;  %s201_s17 = sadd.s32 1, %s998_s23 }
  0x17   : > { %s1390_s11 = smov (%p37_p4, %s1388_s11), 0  ;;  %p211_p8 = scmp.ne.s32.totalorder %s998_s23, %s994_s22 }
  0x18   : > { %1352 = sst [smem:[#allocation17_spill]] %s1390_s11  ;;  %p1160_p7 = por %p1151_p6, %p191_p5 }
  0x19   : > { %s170_s19 = ssub.s32 %s1026_s30, %s1390_s11  ;;  %p217_p9 = scmp.ne.s32.totalorder %s994_s22, %s990_s21 }
  0x1a   : > { %s1353_s18 = scalar_select %p1160_p7, 1, 0 }
  0x1b   : > { %s172_s20 = sor.u32 %s171_s14, %s170_s19  ;;  %p199_p10 = scmp.eq.s32.totalorder %s170_s19, 0 }
  0x1c   : > { %1354 = sst [smem:[#allocation18_spill]] %s1353_s18  ;;  %p173_p11 = scmp.eq.s32.totalorder %s172_s20, 0 }
  0x1d   : > { %p1172_p12 = por %p211_p8, %p1134_p2  ;;  %p1184_p13 = por %p217_p9, %p1151_p6 }
  0x1e   : > { %s1177_s9 = scalar_select %p199_p10, %s998_s23, %s201_s17  }
  0x1f   : > { %s1355_s8 = scalar_select %p1172_p12, 1, 0 }
  0x20   : > { %1357 = sst [smem:[#allocation20_spill]] %s1177_s9  ;;  %p734_p0 = scmp.ge.s32.totalorder %s1030_s7, 1 }
  0x21   : > { %1356 = sst [smem:[#allocation19_spill]] %s1355_s8  ;;  %p279_p1 = scmp.lt.s32.totalorder %s1030_s7, 9 }
  0x22   : > { %s1180_s10 = scalar_select %p173_p11, %s1010_s26, %s175_s12  }
  0x23   : > { %s1359_s29 = scalar_select %p1184_p13, 1, 0 }
  0x24   : > { %1358 = sst [smem:[#allocation21_spill]] %s1180_s10  ;;  %p280_p4 = pnand %p734_p0, %p279_p1 }
  0x25   : > { %1360 = sst [smem:[#allocation22_spill]] %s1359_s29  ;;  %s1330_s13 = sand.u32 (!%p280_p4), 1, %s1006_s25  }
  0x26   : > { %283 = sbr.rel (%p280_p4) target bundleno = 713 (0x2c9), region = 40  ;;  %s1333_s12 = sand.u32 (!%p280_p4), 1, %s994_s22  }
  0x27   : > { %s1194_s14 = sshll.u32 (!%p280_p4), %s1330_s13, 3  ;;  %s1198_s16 = sshll.u32 (!%p280_p4), %s1333_s12, 3 }
  0x28   : > { %p337_p2 = scmp.lt.s32.totalorder (!%p280_p4), %s1018_s28, 1  ;;  %p339_p5 = scmp.lt.s32.totalorder (!%p280_p4), %s1014_s27, 3 }
  0x29   : > { %p744_p6 = scmp.ne.s32.totalorder (!%p280_p4), %s1014_s27, 0 }
  0x2b   : > { %s338_s17 = scalar_select %p337_p2, %s1018_s28, 1 }
  0x2c   : > { %s340_s19 = scalar_select %p339_p5, %s1014_s27, 3 }
  0x2d   : > { %s737_s20 = sshll.u32 %s338_s17, 2  ;;  %s329_s17 = scalar_lea.vmem [#allocation3], %s1194_s14 }
  0x2e   : > { %s342_s11 = sadd.s32 %s737_s20, %s340_s19  ;;  %s743_s30 = sshll.u32 %s340_s19, 2 }
  0x2f   : > { %s738_s10 = sshll.u32 %s342_s11, 2  ;;  %s364_s23 = scalar_lea.vmem %s1319_s3, %s743_s30 }
  0x30   : > { %s344_s21 = scalar_lea.vmem %s1316_s0, %s738_s10  ;;  %s352_s24 = scalar_lea.vmem %s1317_s1, %s738_s10 }
  0x31   : > { %s360_s8 = scalar_lea.vmem %s1318_s2, %s738_s10  ;;  %s336_s20 = scalar_lea.vmem [#allocation5], %s1198_s16 }
  0x32   : > { %369 = sbr.rel (%p744_p6) target bundleno = 57 (0x39), region = 44 }
  0x37   : > { %vm370_vm0 = vcmask 261120   ;;  %v1032_v0 = vmov 0.0  }
  0x38   : > { %371 = vst.msk [vmem:[#allocation2] sm:$0xff] %vm370_vm0, %v1032_v0 }
  0x39 PF: > { %v373_v1 = vld [vmem:[%s352_s24] sm:$0xf]  ;;  %vm375_vm1 = vcmask 64512   ;;  %v1033_v2 = vmov 0.0   ;;  %vm1034_vm2 = vmmov 0   ;;  %vm428_vm3 = vcmask 1043456  }
  0x3a   : > { %763 = vmatprep.subr.bf16.mxu0 %v1033_v2  ;;  %v380_v3 = vsel %vm375_vm1, %v373_v1, 0  ;;  %765 = vmatprep.mubr.msk.bf16.mxu0 %vm1034_vm2, %v1033_v2  ;;  %v372_v4 = vld [vmem:[%s344_s21] sm:$0xf]  ;;  %vm522_vm4 = vcmask 261120   ;;  %p748_p8 = scmp.ne.s32.totalorder %s1014_s27, 3 }
  0x3b   : > { %764 = vmatpush3.bf16.xpose.msra.mxu0 %v380_v3  ;;  %769 = vmatprep.subr.bf16.mxu1 %v1033_v2  ;;  %v374_v5 = vld [vmem:[%s360_s8] sm:$0xf] }
  0x3c   : > { %771 = vmatprep.mubr.msk.bf16.mxu1 %vm1034_vm2, %v1033_v2  ;;  %v430_v6 = vsel %vm428_vm3, %v374_v5, 0  ;;  %v474_v8 = vld [vmem:[%s364_s23] sm:$0xf] }
  0x3d   : > { %770 = vmatpush3.bf16.msra.mxu1 %v430_v6  ;;  %v479_v12 = vsel %vm428_vm3, %v474_v8, 0 }
  0x3e   : > { %775 = vmatprep.subr.bf16.mxu1 %v1033_v2 }
  0x3f   : > { %v472_v20 = vld [vmem:[#allocation2] sm:$0xff] }
  0x42   : > { %766 = vmatmul.mubr.msk.bf16.vlgmr.msra.gmra.mxu0 %vm375_vm1, %v372_v4 }
 0x102   : > { %v416_v7 = vpop.f32.mrf.mxu0 }
 0x103   : > { %v422_v9 = vmul.f32 0.35355338, %v416_v7 }
 0x104   : > { %v767_v10 = vpop.f32.mrf.mxu0 }
 0x105   : > { %423 = vst.msk [vmem:[%s329_s17] sm:$0xff] %vm375_vm1, %v422_v9  ;;  %v424_v11 = vpack.c.bf16 %v422_v9, %v422_v9 }
 0x106   : > { %v419_v13 = vpop.f32.mrf.mxu0 }
 0x107   : > { %772 = vmatmul.mubr.msk.bf16.vlgmr.msra.gmra.mxu1 %vm375_vm1, %v424_v11 }
 0x108   : > { %v768_v14 = vpop.f32.mrf.mxu0  ;;  %776 = vmatpush3.bf16.msra.mxu1 %v479_v12  ;;  %777 = vmatprep.mubr.msk.bf16.mxu1 %vm1034_vm2, %v1033_v2 }
 0x1c7   : > { %v466_v15 = vpop.f32.mrf.mxu1 }
 0x1c8   : > { %v473_v16 = vpack.c.bf16 %v466_v15, %v466_v15 }
 0x1c9   : > { %v773_v17 = vpop.f32.mrf.mxu1 }
 0x1ca   : > { %778 = vmatmul.mubr.msk.bf16.vlgmr.msra.gmra.mxu1 %vm375_vm1, %v473_v16 }
 0x1cb   : > { %v469_v18 = vpop.f32.mrf.mxu1 }
 0x1cd   : > { %v774_v19 = vpop.f32.mrf.mxu1 }
 0x28a   : > { %v515_v21 = vpop.f32.mrf.mxu1 }
 0x28b   : > { %v521_v22 = vadd.f32 %v515_v21, %v472_v20 }
 0x28c   : > { %v779_v23 = vpop.f32.mrf.mxu1  ;;  %527 = sbr.rel (%p748_p8) target bundleno = 664 (0x298), region = 48 }
 0x28d   : > { %523 = vst.msk [vmem:[#allocation2] sm:$0xff] %vm522_vm4, %v521_v22 }
 0x28e   : > { %v518_v24 = vpop.f32.mrf.mxu1 }
 0x290   : > { %v780_v25 = vpop.f32.mrf.mxu1 }
 0x291   : > { %v749_v27 = vld [vmem:[%s1320_s4] ss:$0 sm:$0xff] }
 0x294   : > { %v528_v26 = vld [vmem:[#allocation2] sm:$0xff] }
 0x295   : > { %v536_v28 = vadd.f32 %v749_v27, %v528_v26 }
 0x297   : > { %537 = vst.msk [vmem:[%s336_s20] sm:$0xff] %vm522_vm4, %v536_v28 }
 0x298 PF: > { %s752_s23 = sshll.u32 %s1018_s28, 2  ;;  %s559_s26 = sshll.u32 %s329_s17, 4  ;;  %s560_s26 = int_to_ptr.vmem [resolvable:$true] %s559_s26 }
 0x299   : > { %s555_s24 = sadd.s32 %s1014_s27, %s752_s23  ;;  %s1361_s11 = sand.u32 1, %s1006_s25  }
 0x29a   : > { %s753_s29 = sshll.u32 %s555_s24, 7  ;;  %s539_s18 = scalar_lea.sflag [#allocation4], %s1361_s11 }
 0x29b   : > { %s557_s10 = scalar_lea.hbm %s1321_s5, %s753_s29  ;;  %s884_s8 = scalar_lea.vmem %s560_s26, 128 }
 0x29c   : > { %p885_p9 = scmp.ne.s32.totalorder %s560_s26, %s884_s8  ;;  %s1035_s9 = smov [#allocation3]  }
 0x29d   : > { %s888_s13 = sshll.u32 %s1035_s9, 4  ;;  %s889_s13 = int_to_ptr.vmem [resolvable:$false] %s888_s13 }
 0x29e   : > { %p886_p10 = pnand %p885_p9, %p1145_p3  ;;  %s890_s12 = scalar_lea.vmem %s889_s13, 256 }
 0x29f   : > { %p891_p0 = scmp.lt.s32.totalorder %s560_s26, %s889_s13  ;;  %p892_p1 = scmp.lt.s32.totalorder %s890_s12, %s884_s8 }
 0x2a0   : > { %p887_p11 = pneg %p886_p10 }
 0x2a1   : > { %p893_p4 = por %p892_p1, %p891_p0 }
 0x2a3   : > { %p894_p2 = pnand %p893_p4, %p887_p11 }
 0x2a5   : > { %897 = shalt.err (!%p894_p2)
}
 0x2a6   : > { %s898_s27 = scalar_lea.hbm %s557_s10, 128  ;;  %s902_s17 = scalar_lea.hbm %s1321_s5, 1024 }
 0x2a7   : > { %p899_p5 = scmp.ne.s32.totalorder %s557_s10, %s898_s27  ;;  %p903_p9 = scmp.lt.s32.totalorder %s557_s10, %s1321_s5 }
 0x2a8   : > { %p904_p10 = scmp.lt.s32.totalorder %s902_s17, %s898_s27 }
 0x2a9   : > { %p900_p6 = pnand %p899_p5, %p1145_p3 }
 0x2aa   : > { %p905_p13 = por %p904_p10, %p903_p9 }
 0x2ab   : > { %p901_p8 = pneg %p900_p6 }
 0x2ad   : > { %p906_p7 = pnand %p905_p13, %p901_p8 }
 0x2af   : > { %909 = shalt.err (!%p906_p7)
}
 0x2b0   : > { %781 = dma.vmem_to_hbm [thread:$0]  (%p1145_p3), %s560_s26, 128, %s557_s10, %s539_s18  }
 0x2b1   : > { %s754_s24 = sshll.u32 %s1018_s28, 7  ;;  %s572_s29 = sshll.u32 %s336_s20, 4  ;;  %s573_s29 = int_to_ptr.vmem [resolvable:$true] %s572_s29 }
 0x2b2   : > { %s1363_s11 = sld [smem:[#allocation23_spill]]  ;;  %s1364_s9 = sand.u32 1, %s994_s22  }
 0x2b3   : > { %s544_s13 = scalar_lea.sflag [#allocation6], %s1364_s9  ;;  %s910_s12 = scalar_lea.vmem %s573_s29, 128 }
 0x2b4   : > { %p911_p13 = scmp.ne.s32.totalorder %s573_s29, %s910_s12  ;;  %s1036_s15 = smov [#allocation5]  }
 0x2b5   : > { %s914_s27 = sshll.u32 %s1036_s15, 4  ;;  %s915_s27 = int_to_ptr.vmem [resolvable:$false] %s914_s27 }
 0x2b6   : > { %p912_p7 = pnand %p911_p13, %p1172_p12  ;;  %s916_s14 = scalar_lea.vmem %s915_s27, 256 }
 0x2b7   : > { %p917_p3 = scmp.lt.s32.totalorder %s573_s29, %s915_s27  ;;  %p918_p0 = scmp.lt.s32.totalorder %s916_s14, %s910_s12 }
 0x2b8   : > { %s570_s8 = scalar_lea.hbm %s1363_s11, %s754_s24  ;;  %p913_p11 = pneg %p912_p7 }
 0x2b9   : > { %p919_p1 = por %p918_p0, %p917_p3 }
 0x2bb   : > { %p920_p4 = pnand %p919_p1, %p913_p11 }
 0x2bd   : > { %923 = shalt.err (!%p920_p4)
}
 0x2be   : > { %s924_s28 = scalar_lea.hbm %s570_s8, 128  ;;  %s928_s26 = scalar_lea.hbm %s1363_s11, 256 }
 0x2bf   : > { %p925_p2 = scmp.ne.s32.totalorder %s570_s8, %s924_s28  ;;  %p929_p8 = scmp.lt.s32.totalorder %s570_s8, %s1363_s11 }
 0x2c0   : > { %p930_p9 = scmp.lt.s32.totalorder %s928_s26, %s924_s28 }
 0x2c1   : > { %p926_p5 = pnand %p925_p2, %p1172_p12 }
 0x2c2   : > { %p931_p10 = por %p930_p9, %p929_p8 }
 0x2c3   : > { %p927_p6 = pneg %p926_p5 }
 0x2c5   : > { %p932_p13 = pnand %p931_p10, %p927_p6 }
 0x2c7   : > { %935 = shalt.err (!%p932_p13)
}
 0x2c8   : > { %782 = dma.vmem_to_hbm [thread:$0]  (%p1172_p12), %s573_s29, 128, %s570_s8, %s544_s13  }
 0x2c9 PF: > { %s1365_s19 = sld [smem:[#allocation15_spill]] }
 0x2ca   : > { %s1366_s17 = sld [smem:[#allocation11_spill]] }
 0x2cb   : > { %s1367_s6 = sld [smem:[#allocation18_spill]] }
 0x2cf   : > { %p792_p7 = scmp.ge.s32.totalorder %s1365_s19, 2 }
 0x2d0   : > { %s584_s21 = sand.u32 1, %s1366_s17  }
 0x2d1   : > { %p1368_p11 = scmp.ne.s32.totalorder %s1367_s6, 0  ;;  %s585_s24 = scalar_lea.sflag [#allocation4], %s584_s21 }
 0x2d3   : > { %p786_p3 = pnand %p792_p7, %p1368_p11 }
 0x2d5   : > { %p787_p0 = pneg %p786_p3 }
 0x2d7   : > { %981 = dma.done.wait (%p787_p0), %s585_s24, 128  }
 0x2d8   : > { %983 = vsyncadd (%p787_p0), %s585_s24, 4294967168  ;;  %s1369_s30 = sld [smem:[#allocation9_spill]] }
 0x2d9   : > { %s1370_s7 = sld [smem:[#allocation22_spill]] }
 0x2de   : > { %s593_s9 = sand.u32 1, %s1369_s30  }
 0x2df   : > { %p1371_p1 = scmp.ne.s32.totalorder %s1370_s7, 0  ;;  %s594_s23 = scalar_lea.sflag [#allocation6], %s593_s9 }
 0x2e1   : > { %p789_p4 = pnand %p792_p7, %p1371_p1 }
 0x2e3   : > { %p790_p2 = pneg %p789_p4 }
 0x2e5   : > { %985 = dma.done.wait (%p790_p2), %s594_s23, 128  }
 0x2e6   : > { %987 = vsyncadd (%p790_p2), %s594_s23, 4294967168  ;;  %s23_s7 = sadd.s32 1, %s1365_s19   ;;  %s1372_s29 = sld [smem:[#allocation10_spill]] }
 0x2e7   : > { %p20_p12 = scmp.ge.s32.totalorder %s23_s7, 10   ;;  %s1373_s23 = sld [smem:[#allocation20_spill]] }
 0x2e8   : > { %s1374_s8 = sld [smem:[#allocation12_spill]]  ;;  %s1380_s21 = smov %s994_s22 }
 0x2e9   : > { %s1375_s26 = sld [smem:[#allocation21_spill]]  ;;  %s1382_s24 = smov %s1006_s25 }
 0x2ea   : > { %s1376_s27 = sld [smem:[#allocation13_spill]] }
 0x2eb   : > { %s1377_s28 = sld [smem:[#allocation14_spill]] }
 0x2ec   : > { %s1378_s13 = sld [smem:[#allocation16_spill]]  ;;  %s1381_s22 = smov %s1372_s29 }
 0x2ed   : > { %s1379_s30 = sld [smem:[#allocation17_spill]] }
 0x2ee   : > { %s1383_s25 = smov %s1374_s8  ;;  %22 = sbr.rel (!%p20_p12) target bundleno = 11 (0xb), region = 109 }
 0x2f2   : > { %s1384_s29 = smov %s1378_s13 }
 0x2f3   :  { %599 = vsyncpa [#allocation4], 1 }
 0x2f4   :  { %601 = vsyncpa [#allocation4 + $0x1], 1 }
 0x2f5   :  { %602 = vsyncpa [#allocation6], 1 }
 0x2f6   :  { %604 = vsyncpa [#allocation6 + $0x1], 1 }

</bundles_post_ra>
